<compile_context>
chip_gen: v7x
topology: tpu7x:2x2x1
jax: 0.10.0
libtpu: 0.0.40
codegen_flags: <defaults>
</compile_context>

<pallas_src>
import jax
import jax.numpy as jnp
from jax.experimental import pallas as pl
from jax.experimental.pallas import tpu as pltpu


def _round_up(n, m):
    return (n + m - 1) // m * m


def _mlp_kernel(x_ref, w1_ref, b1_ref, w2_ref, b2_ref, w3_ref, b3_ref, o_ref):
    # fc1 + relu  (bf16 operands, f32 accumulation, f32 epilogue)
    h1 = jnp.dot(x_ref[...], w1_ref[...], preferred_element_type=jnp.float32)
    h1 = jnp.maximum(h1 + b1_ref[...], 0.0)
    # fc2 + relu
    h2 = jnp.dot(h1.astype(jnp.bfloat16), w2_ref[...],
                 preferred_element_type=jnp.float32)
    h2 = jnp.maximum(h2 + b2_ref[...], 0.0)
    # fc3 (no activation)
    out = jnp.dot(h2.astype(jnp.bfloat16), w3_ref[...],
                  preferred_element_type=jnp.float32)
    o_ref[...] = (out + b3_ref[...]).astype(o_ref.dtype)


def mlp_forward(x, params, tile_b=None):
    """x: [B, input_dim] float32. params: dict of transposed weights ([in, out]) and
    biases ([1, out]) in float32 (as produced by init_mlp_params)."""
    w1, b1, w2, b2, w3, b3 = (params["w1"], params["b1"], params["w2"],
                              params["b2"], params["w3"], params["b3"])
    B, in_dim = x.shape
    hidden_dim = w1.shape[1]
    out_dim = w3.shape[1]

    # --- pad feature dims to lane-dense multiples of 128 -------------------
    in_p = _round_up(in_dim, 128)
    out_p = _round_up(out_dim, 128)
    hid_p = _round_up(hidden_dim, 128)          # 256 already a multiple

    # --- batch tiling -------------------------------------------------------
    if tile_b is None:
        tile_b = min(1024, _round_up(max(B, 1), 128))   # sweepable: 512-2048
    tile_b = _round_up(tile_b, 8)
    B_p = _round_up(max(B, 1), tile_b)
    grid_b = B_p // tile_b

    f32, bf16 = jnp.float32, jnp.bfloat16
    x_p = jnp.zeros((B_p, in_p), bf16).at[:B, :in_dim].set(x.astype(bf16))
    w1_p = jnp.zeros((in_p, hid_p), bf16).at[:in_dim, :hidden_dim].set(w1.astype(bf16))
    w2_p = jnp.zeros((hid_p, hid_p), bf16).at[:hidden_dim, :hidden_dim].set(w2.astype(bf16))
    w3_p = jnp.zeros((hid_p, out_p), bf16).at[:hidden_dim, :out_dim].set(w3.astype(bf16))
    b1_p = jnp.zeros((1, hid_p), f32).at[:, :hidden_dim].set(b1.astype(f32))
    b2_p = jnp.zeros((1, hid_p), f32).at[:, :hidden_dim].set(b2.astype(f32))
    b3_p = jnp.zeros((1, out_p), f32).at[:, :out_dim].set(b3.astype(f32))

    # Activations follow the batch grid; weights/biases are resident (constant index_map).
    batch_spec = lambda d: pl.BlockSpec((tile_b, d), lambda i: (i, 0))
    resident = lambda shape: pl.BlockSpec(shape, lambda i: (0, 0))

    out_padded = pl.pallas_call(
        _mlp_kernel,
        out_shape=jax.ShapeDtypeStruct((B_p, out_p), jnp.float32),
        grid=(grid_b,),
        in_specs=[
            batch_spec(in_p),
            resident(w1_p.shape), resident(b1_p.shape),
            resident(w2_p.shape), resident(b2_p.shape),
            resident(w3_p.shape), resident(b3_p.shape),
        ],
        out_specs=batch_spec(out_p),
        compiler_params=pltpu.CompilerParams(
            dimension_semantics=("parallel",)),
    )(x_p, w1_p, b1_p, w2_p, b2_p, w3_p, b3_p)

    return out_padded[:B, :out_dim]


def init_mlp_params(key, input_dim, output_dim, hidden_dim=256, dtype=jnp.float32):
    """Deterministic init mimicking nn.Linear default (U(-1/sqrt(fan_in), 1/sqrt(fan_in))).
    Weights are stored transposed: [in_features, out_features]."""
    keys = jax.random.split(key, 6)

    def linear(kw, kb, fan_in, fan_out):
        bound = 1.0 / jnp.sqrt(fan_in)
        w = jax.random.uniform(kw, (fan_in, fan_out), dtype, -bound, bound)
        b = jax.random.uniform(kb, (1, fan_out), dtype, -bound, bound)
        return w, b

    w1, b1 = linear(keys[0], keys[1], input_dim, hidden_dim)
    w2, b2 = linear(keys[2], keys[3], hidden_dim, hidden_dim)
    w3, b3 = linear(keys[4], keys[5], hidden_dim, output_dim)
    return {"w1": w1, "b1": b1, "w2": w2, "b2": b2, "w3": w3, "b3": b3}


if __name__ == "__main__":
    key = jax.random.PRNGKey(0)
    k_x, k_p = jax.random.split(key)

    # Note: at batch=8 the problem is launch-overhead bound; the kernel is structured so
    # larger batches (512-2048 rows per tile) stream through the same code path.
    batch = 8
    input_dim = 32
    output_dim = 8
    hidden_dim = 256

    x = jax.random.normal(k_x, (batch, input_dim), dtype=jnp.float32)
    params = init_mlp_params(k_p, input_dim, output_dim, hidden_dim)

    out = mlp_forward(x, params)
    jax.block_until_ready(out)
    assert out.shape == (batch, output_dim)

    # Reference 1: same bf16-operand / f32-accumulate recipe as the kernel (tight check).
    bf16 = jnp.bfloat16
    h1b = jnp.maximum(
        jnp.dot(x.astype(bf16), params["w1"].astype(bf16),
                preferred_element_type=jnp.float32) + params["b1"], 0.0)
    h2b = jnp.maximum(
        jnp.dot(h1b.astype(bf16), params["w2"].astype(bf16),
                preferred_element_type=jnp.float32) + params["b2"], 0.0)
    ref_bf16 = jnp.dot(h2b.astype(bf16), params["w3"].astype(bf16),
                       preferred_element_type=jnp.float32) + params["b3"]
    assert jnp.allclose(out, ref_bf16, atol=1e-3, rtol=1e-3), (
        f"max abs err vs bf16 ref: {jnp.max(jnp.abs(out - ref_bf16))}")

    # Reference 2: full-f32 reference (loose check; bf16 operands lose ~3 decimal digits).
    h1 = jnp.maximum(x @ params["w1"] + params["b1"], 0.0)
    h2 = jnp.maximum(h1 @ params["w2"] + params["b2"], 0.0)
    ref_f32 = h2 @ params["w3"] + params["b3"]
    assert jnp.allclose(out, ref_f32, atol=2e-2, rtol=2e-2), (
        f"max abs err vs f32 ref: {jnp.max(jnp.abs(out - ref_f32))}")

    print("KERNEL_OK")
</pallas_src>

<mosaic_0001>
module attributes {stable_mosaic.version = 11 : i64} {
  func.func @_mlp_kernel(%arg0: i32, %arg1: memref<128x128xbf16, #tpu.memory_space<vmem>>, %arg2: memref<128x256xbf16, #tpu.memory_space<vmem>>, %arg3: memref<1x256xf32, #tpu.memory_space<vmem>>, %arg4: memref<256x256xbf16, #tpu.memory_space<vmem>>, %arg5: memref<1x256xf32, #tpu.memory_space<vmem>>, %arg6: memref<256x128xbf16, #tpu.memory_space<vmem>>, %arg7: memref<1x128xf32, #tpu.memory_space<vmem>>, %arg8: memref<128x128xf32, #tpu.memory_space<vmem>>) attributes {dimension_semantics = [#tpu.dimension_semantics<parallel>], iteration_bounds = array<i64: 1>, scalar_prefetch = 0 : i64, scratch_operands = 0 : i64, tpu.core_type = #tpu.core_type<tc>, window_params = [{transform_indices = @transform_0, window_bounds = array<i64: 128, 128>}, {pipeline_mode = #tpu.pipeline_mode<synchronous>, transform_indices = @transform_1, window_bounds = array<i64: 128, 256>}, {pipeline_mode = #tpu.pipeline_mode<synchronous>, transform_indices = @transform_2, window_bounds = array<i64: 1, 256>}, {pipeline_mode = #tpu.pipeline_mode<synchronous>, transform_indices = @transform_3, window_bounds = array<i64: 256, 256>}, {pipeline_mode = #tpu.pipeline_mode<synchronous>, transform_indices = @transform_4, window_bounds = array<i64: 1, 256>}, {pipeline_mode = #tpu.pipeline_mode<synchronous>, transform_indices = @transform_5, window_bounds = array<i64: 256, 128>}, {pipeline_mode = #tpu.pipeline_mode<synchronous>, transform_indices = @transform_6, window_bounds = array<i64: 1, 128>}, {transform_indices = @transform_7, window_bounds = array<i64: 128, 128>}]} {
    %c0 = arith.constant 0 : index
    %c0_0 = arith.constant 0 : index
    %0 = vector.load %arg1[%c0, %c0_0] : memref<128x128xbf16, #tpu.memory_space<vmem>>, vector<128x128xbf16>
    %c0_1 = arith.constant 0 : index
    %c0_2 = arith.constant 0 : index
    %1 = vector.load %arg2[%c0_1, %c0_2] : memref<128x256xbf16, #tpu.memory_space<vmem>>, vector<128x256xbf16>
    %cst = arith.constant dense<0.000000e+00> : vector<128x256xf32>
    %2 = tpu.matmul %0, %1, %cst {dimension_numbers = #tpu.dot_dimension_numbers<[1], [0], [0], [1], [0, 0, 1, 1], [], []>} : vector<128x128xbf16>, vector<128x256xbf16>, vector<128x256xf32> -> vector<128x256xf32>
    %c0_3 = arith.constant 0 : index
    %c0_4 = arith.constant 0 : index
    %3 = vector.load %arg3[%c0_3, %c0_4] : memref<1x256xf32, #tpu.memory_space<vmem>>, vector<1x256xf32>
    %4 = vector.broadcast %3 : vector<1x256xf32> to vector<128x256xf32>
    %5 = arith.addf %2, %4 : vector<128x256xf32>
    %cst_5 = arith.constant 0.000000e+00 : f32
    %6 = vector.broadcast %cst_5 : f32 to vector<128x256xf32>
    %7 = arith.maximumf %5, %6 : vector<128x256xf32>
    %8 = arith.truncf %7 : vector<128x256xf32> to vector<128x256xbf16>
    %c0_6 = arith.constant 0 : index
    %c0_7 = arith.constant 0 : index
    %9 = vector.load %arg4[%c0_6, %c0_7] : memref<256x256xbf16, #tpu.memory_space<vmem>>, vector<256x256xbf16>
    %cst_8 = arith.constant dense<0.000000e+00> : vector<128x256xf32>
    %10 = tpu.matmul %8, %9, %cst_8 {dimension_numbers = #tpu.dot_dimension_numbers<[1], [0], [0], [1], [0, 0, 1, 1], [], []>} : vector<128x256xbf16>, vector<256x256xbf16>, vector<128x256xf32> -> vector<128x256xf32>
    %c0_9 = arith.constant 0 : index
    %c0_10 = arith.constant 0 : index
    %11 = vector.load %arg5[%c0_9, %c0_10] : memref<1x256xf32, #tpu.memory_space<vmem>>, vector<1x256xf32>
    %12 = vector.broadcast %11 : vector<1x256xf32> to vector<128x256xf32>
    %13 = arith.addf %10, %12 : vector<128x256xf32>
    %cst_11 = arith.constant 0.000000e+00 : f32
    %14 = vector.broadcast %cst_11 : f32 to vector<128x256xf32>
    %15 = arith.maximumf %13, %14 : vector<128x256xf32>
    %16 = arith.truncf %15 : vector<128x256xf32> to vector<128x256xbf16>
    %c0_12 = arith.constant 0 : index
    %c0_13 = arith.constant 0 : index
    %17 = vector.load %arg6[%c0_12, %c0_13] : memref<256x128xbf16, #tpu.memory_space<vmem>>, vector<256x128xbf16>
    %cst_14 = arith.constant dense<0.000000e+00> : vector<128x128xf32>
    %18 = tpu.matmul %16, %17, %cst_14 {dimension_numbers = #tpu.dot_dimension_numbers<[1], [0], [0], [1], [0, 0, 1, 1], [], []>} : vector<128x256xbf16>, vector<256x128xbf16>, vector<128x128xf32> -> vector<128x128xf32>
    %c0_15 = arith.constant 0 : index
    %c0_16 = arith.constant 0 : index
    %19 = vector.load %arg7[%c0_15, %c0_16] : memref<1x128xf32, #tpu.memory_space<vmem>>, vector<1x128xf32>
    %20 = vector.broadcast %19 : vector<1x128xf32> to vector<128x128xf32>
    %21 = arith.addf %18, %20 : vector<128x128xf32>
    %c0_17 = arith.constant 0 : index
    %c0_18 = arith.constant 0 : index
    %22 = vector.load %arg8[%c0_17, %c0_18] : memref<128x128xf32, #tpu.memory_space<vmem>>, vector<128x128xf32>
    tpu.vector_store %arg8[%c0_17, %c0_18], %21 {strides = array<i32>} : memref<128x128xf32, #tpu.memory_space<vmem>>, vector<128x128xf32>,
    return
  }
  func.func @transform_0(%arg0: i32) -> (i32, i32) {
    %c0_i32 = arith.constant 0 : i32
    %c0_i32_0 = arith.constant 0 : i32
    return %arg0, %c0_i32 : i32, i32
  }
  func.func @transform_1(%arg0: i32) -> (i32, i32) {
    %c0_i32 = arith.constant 0 : i32
    %c0_i32_0 = arith.constant 0 : i32
    %c0_i32_1 = arith.constant 0 : i32
    return %c0_i32, %c0_i32_0 : i32, i32
  }
  func.func @transform_2(%arg0: i32) -> (i32, i32) {
    %c0_i32 = arith.constant 0 : i32
    %c0_i32_0 = arith.constant 0 : i32
    %c0_i32_1 = arith.constant 0 : i32
    return %c0_i32, %c0_i32_0 : i32, i32
  }
  func.func @transform_3(%arg0: i32) -> (i32, i32) {
    %c0_i32 = arith.constant 0 : i32
    %c0_i32_0 = arith.constant 0 : i32
    %c0_i32_1 = arith.constant 0 : i32
    return %c0_i32, %c0_i32_0 : i32, i32
  }
  func.func @transform_4(%arg0: i32) -> (i32, i32) {
    %c0_i32 = arith.constant 0 : i32
    %c0_i32_0 = arith.constant 0 : i32
    %c0_i32_1 = arith.constant 0 : i32
    return %c0_i32, %c0_i32_0 : i32, i32
  }
  func.func @transform_5(%arg0: i32) -> (i32, i32) {
    %c0_i32 = arith.constant 0 : i32
    %c0_i32_0 = arith.constant 0 : i32
    %c0_i32_1 = arith.constant 0 : i32
    return %c0_i32, %c0_i32_0 : i32, i32
  }
  func.func @transform_6(%arg0: i32) -> (i32, i32) {
    %c0_i32 = arith.constant 0 : i32
    %c0_i32_0 = arith.constant 0 : i32
    %c0_i32_1 = arith.constant 0 : i32
    return %c0_i32, %c0_i32_0 : i32, i32
  }
  func.func @transform_7(%arg0: i32) -> (i32, i32) {
    %c0_i32 = arith.constant 0 : i32
    %c0_i32_0 = arith.constant 0 : i32
    return %arg0, %c0_i32 : i32, i32
  }
}

</mosaic_0001>

<bundles_post_ra>
// kernel: tpu_custom_call.1
= control target key start
LH: loop header
LB: loop body
LE: loop exit
PB: predicated region body
PF: predicated region fallthrough
CT: control target
= control target key end

     0   :  { %12 = vsyncpa [#allocation3], 0  ;;  %s1700_s0 = inlined_call_operand.hbm [shape: bf16[128,128], index: 0, kind: input, shape index: {}]   ;;  %s1701_s1 = inlined_call_operand.hbm [shape: bf16[128,256], index: 1, kind: input, shape index: {}]   ;;  %s1702_s2 = inlined_call_operand.vmem [shape: f32[1,256], index: 2, kind: input, shape index: {}]   ;;  %s1703_s3 = inlined_call_operand.hbm [shape: bf16[256,256], index: 3, kind: input, shape index: {}]   ;;  %s1704_s4 = inlined_call_operand.vmem [shape: f32[1,256], index: 4, kind: input, shape index: {}]   ;;  %s1705_s5 = inlined_call_operand.hbm [shape: bf16[256,128], index: 5, kind: input, shape index: {}]   ;;  %s1706_s6 = inlined_call_operand.vmem [shape: f32[1,128], index: 6, kind: input, shape index: {}]   ;;  %s1707_s7 = inlined_call_operand.hbm [shape: f32[128,128], index: 7, kind: output, shape index: {}]  }
   0x1   :  { %13 = vsyncpa [#allocation6], 0 }
   0x2   :  { %14 = vsyncpa [#allocation9], 0 }
   0x3   :  { %15 = vsyncpa [#allocation4], 0  ;;  %s1425_s24 = smov [#allocation5]   ;;  %s1307_s28 = scalar_lea.hbm %s1701_s1, 2048 }
   0x4   :  { %s33_s25 = sshll.u32 %s1425_s24, 4  ;;  %p1308_p0 = scmp.ne.s32.totalorder %s1701_s1, %s1307_s28  ;;  %s34_s25 = int_to_ptr.vmem [resolvable:$true] %s33_s25 }
   0x5   :  { %p1311_p1 = scmp.lt.u32.totalorder %s1307_s28, %s1701_s1 }
   0x7   :  { %p1313_p2 = pnand %p1311_p1, %p1308_p0 }
   0x9   :  { %1316 = shalt.err (!%p1313_p2)
}
   0xa   :  { %s1317_s10 = scalar_lea.vmem %s34_s25, 2048  ;;  %p1322_p4 = scmp.lt.s32.totalorder %s34_s25, %s34_s25 }
   0xb   :  { %p1318_p3 = scmp.ne.s32.totalorder %s34_s25, %s1317_s10  ;;  %p1323_p5 = scmp.lt.s32.totalorder %s1317_s10, %s1317_s10 }
   0xd   :  { %p1324_p6 = por %p1323_p5, %p1322_p4 }
   0xf   :  { %p1325_p7 = pnand %p1324_p6, %p1318_p3 }
  0x11   :  { %1328 = shalt.err (!%p1325_p7)
}
  0x12   :  { %s1426_s11 = smov 128   ;;  %s1427_s12 = smov 8  }
  0x13   :  { %39 = dma.hbm_to_vmem [thread:$0]  %s1701_s1, 2048, %s34_s25, [#allocation6], %s1426_s11, %s1426_s11, %s1427_s12  }
  0x14   :  { %s1428_s15 = smov [#allocation2]   ;;  %s1329_s19 = scalar_lea.hbm %s1700_s0, 1024 }
  0x15   :  { %s21_s16 = sshll.u32 %s1428_s15, 4  ;;  %p1330_p8 = scmp.ne.s32.totalorder %s1700_s0, %s1329_s19  ;;  %s22_s16 = int_to_ptr.vmem [resolvable:$true] %s21_s16 }
  0x16   :  { %p1333_p9 = scmp.lt.u32.totalorder %s1329_s19, %s1700_s0 }
  0x18   :  { %p1335_p10 = pnand %p1333_p9, %p1330_p8 }
  0x1a   :  { %1338 = shalt.err (!%p1335_p10)
}
  0x1b   :  { %s1339_s24 = scalar_lea.vmem %s22_s16, 1024  ;;  %p1344_p12 = scmp.lt.s32.totalorder %s22_s16, %s22_s16 }
  0x1c   :  { %p1340_p11 = scmp.ne.s32.totalorder %s22_s16, %s1339_s24  ;;  %p1345_p13 = scmp.lt.s32.totalorder %s1339_s24, %s1339_s24 }
  0x1e   :  { %p1346_p0 = por %p1345_p13, %p1344_p12 }
  0x20   :  { %p1347_p1 = pnand %p1346_p0, %p1340_p11 }
  0x22   :  { %1350 = shalt.err (!%p1347_p1)
}
  0x23   :  { %s1429_s1 = smov 64   ;;  %s1430_s25 = smov 4  }
  0x24   :  { %27 = dma.hbm_to_vmem [thread:$0]  %s1700_s0, 1024, %s22_s16, [#allocation3], %s1429_s1, %s1429_s1, %s1430_s25  }
  0x25   :  { %s1431_s28 = smov [#allocation7]   ;;  %s1432_s30 = smov [#allocation8]  }
  0x26   :  { %s47_s29 = sshll.u32 %s1431_s28, 4  ;;  %s61_s8 = sshll.u32 %s1432_s30, 4  ;;  %s48_s29 = int_to_ptr.vmem [resolvable:$true] %s47_s29  ;;  %s1505_s8 = int_to_ptr.vmem [resolvable:$true] %s61_s8 }
  0x27   :  { %s1351_s13 = scalar_lea.hbm %s1703_s3, 4096 }
  0x28   :  { %p1352_p2 = scmp.ne.s32.totalorder %s1703_s3, %s1351_s13  ;;  %p1355_p3 = scmp.lt.u32.totalorder %s1351_s13, %s1703_s3 }
  0x2a   :  { %p1357_p4 = pnand %p1355_p3, %p1352_p2 }
  0x2c   :  { %1360 = shalt.err (!%p1357_p4)
}
  0x2d   :  { %s1361_s0 = scalar_lea.vmem %s48_s29, 4096  ;;  %p1366_p6 = scmp.lt.s32.totalorder %s48_s29, %s48_s29 }
  0x2e   :  { %p1362_p5 = scmp.ne.s32.totalorder %s48_s29, %s1361_s0  ;;  %p1367_p7 = scmp.lt.s32.totalorder %s1361_s0, %s1361_s0 }
  0x30   :  { %p1368_p8 = por %p1367_p7, %p1366_p6 }
  0x32   :  { %p1369_p9 = pnand %p1368_p8, %p1362_p5 }
  0x34   :  { %1372 = shalt.err (!%p1369_p9)
}
  0x35   :  { %53 = dma.hbm_to_vmem [thread:$0]  %s1703_s3, 4096, %s48_s29, [#allocation6], %s1426_s11, %s1426_s11, %s1427_s12  }
  0x36   :  { %s1373_s22 = scalar_lea.hbm %s1705_s5, 2048 }
  0x37   :  { %p1374_p10 = scmp.ne.s32.totalorder %s1705_s5, %s1373_s22  ;;  %p1377_p11 = scmp.lt.u32.totalorder %s1373_s22, %s1705_s5 }
  0x39   :  { %p1379_p12 = pnand %p1377_p11, %p1374_p10 }
  0x3b   :  { %1382 = shalt.err (!%p1379_p12)
}
  0x3c   :  { %s1383_s28 = scalar_lea.vmem %s1505_s8, 2048  ;;  %p1388_p0 = scmp.lt.s32.totalorder %s1505_s8, %s1505_s8 }
  0x3d   :  { %p1384_p13 = scmp.ne.s32.totalorder %s1505_s8, %s1383_s28  ;;  %p1389_p1 = scmp.lt.s32.totalorder %s1383_s28, %s1383_s28 }
  0x3f   :  { %p1390_p2 = por %p1389_p1, %p1388_p0 }
  0x41   :  { %p1391_p3 = pnand %p1390_p2, %p1384_p13 }
  0x43   :  { %1394 = shalt.err (!%p1391_p3)
}
  0x44   :  { %67 = dma.hbm_to_vmem [thread:$0]  %s1705_s5, 2048, %s1505_s8, [#allocation9], %s1429_s1, %s1429_s1, %s1430_s25  }
  0x45   :  { %1417 = dma.done.wait [#allocation3], 1024  }
  0x46   :  { %1418 = vsyncadd [#allocation3], 4294966272 }
  0x47   :  { %1419 = dma.done.wait [#allocation6], 6144  }
  0x48   :  { %1420 = vsyncadd [#allocation6], 4294961152 }
  0x49   :  { %1421 = dma.done.wait [#allocation9], 2048  }
  0x4a   :  { %1422 = vsyncadd [#allocation9], 4294965248  ;;  %v1433_v0 = vmov 0   ;;  %v1211_v1 = vld [vmem:[#allocation5 + $0x4] ss:$8 sps:$4 sm:$0xff]   ;;  %v1237_v34 = vld [vmem:[#allocation2 + $0x10] sm:$0xff]  }
  0x4b   :  { %287 = vmatprep.mubr.bf16.mxu0 %v1433_v0  ;;  %v1213_v2 = vld [vmem:[#allocation5] ss:$8 sps:$4 sm:$0xff]   ;;  %255 = vmatprep.subr.bf16.mxu0 %v1211_v1  ;;  %v1214_v3 = vld [vmem:[#allocation5 + $0x14] ss:$8 sps:$4 sm:$0xff]   ;;  %v1216_v4 = vld [vmem:[#allocation5 + $0x10] ss:$8 sps:$4 sm:$0xff]  }
  0x4c   :  { %256 = vmatpush1.bf16.msra.mxu0 %v1213_v2  ;;  %v1217_v5 = vld [vmem:[#allocation5 + $0x24] ss:$8 sps:$4 sm:$0xff]   ;;  %v1219_v6 = vld [vmem:[#allocation5 + $0x20] ss:$8 sps:$4 sm:$0xff]   ;;  %v1220_v7 = vld [vmem:[#allocation5 + $0x34] ss:$8 sps:$4 sm:$0xff]  }
  0x4d   :  { %257 = vmatprep.subr.bf16.mxu0 %v1214_v3  ;;  %v1222_v8 = vld [vmem:[#allocation5 + $0x30] ss:$8 sps:$4 sm:$0xff]   ;;  %v1223_v9 = vld [vmem:[#allocation5 + $0x44] ss:$8 sps:$4 sm:$0xff]   ;;  %v1225_v10 = vld [vmem:[#allocation5 + $0x40] ss:$8 sps:$4 sm:$0xff]  }
  0x4e   :  { %v1226_v11 = vld [vmem:[#allocation5 + $0x54] ss:$8 sps:$4 sm:$0xff]   ;;  %v1228_v12 = vld [vmem:[#allocation5 + $0x50] ss:$8 sps:$4 sm:$0xff]   ;;  %v1229_v13 = vld [vmem:[#allocation5 + $0x64] ss:$8 sps:$4 sm:$0xff]  }
  0x4f   :  { %v1243_v14 = vld [vmem:[#allocation7 + $0x4] ss:$8 sps:$4 sm:$0xff]   ;;  %v1245_v15 = vld [vmem:[#allocation7] ss:$8 sps:$4 sm:$0xff]   ;;  %v1246_v16 = vld [vmem:[#allocation7 + $0x14] ss:$8 sps:$4 sm:$0xff]  }
  0x50   :  { %258 = vmatpush1.bf16.msra.mxu0 %v1216_v4  ;;  %620 = vmatprep.subr.bf16.mxu1 %v1243_v14  ;;  %v1248_v17 = vld [vmem:[#allocation7 + $0x10] ss:$8 sps:$4 sm:$0xff]   ;;  %v1231_v18 = vld [vmem:[#allocation5 + $0x60] ss:$8 sps:$4 sm:$0xff]   ;;  %v1249_v19 = vld [vmem:[#allocation7 + $0x24] ss:$8 sps:$4 sm:$0xff]   ;;  %v117_v4 = vlaneseq }
  0x51   :  { %259 = vmatprep.subr.bf16.mxu0 %v1217_v5  ;;  %621 = vmatpush1.bf16.msra.mxu1 %v1245_v15  ;;  %v1232_v20 = vld [vmem:[#allocation5 + $0x74] ss:$8 sps:$4 sm:$0xff]   ;;  %v1251_v21 = vld [vmem:[#allocation7 + $0x20] ss:$8 sps:$4 sm:$0xff]   ;;  %v1234_v22 = vld [vmem:[#allocation5 + $0x70] ss:$8 sps:$4 sm:$0xff]  }
  0x52   :  { %622 = vmatprep.subr.bf16.mxu1 %v1246_v16  ;;  %v1252_v23 = vld [vmem:[#allocation7 + $0x34] ss:$8 sps:$4 sm:$0xff]   ;;  %v1235_v24 = vld [vmem:[#allocation2] sm:$0xff]   ;;  %v1254_v25 = vld [vmem:[#allocation7 + $0x30] ss:$8 sps:$4 sm:$0xff]   ;;  %v1568_v5 = vshrl.u32 %v117_v4, 7 }
  0x53   :  { %v1255_v26 = vld [vmem:[#allocation7 + $0x44] ss:$8 sps:$4 sm:$0xff]   ;;  %v1257_v27 = vld [vmem:[#allocation7 + $0x40] ss:$8 sps:$4 sm:$0xff]   ;;  %v1258_v28 = vld [vmem:[#allocation7 + $0x54] ss:$8 sps:$4 sm:$0xff]  }
  0x54   :  { %260 = vmatpush1.bf16.msra.mxu0 %v1219_v6  ;;  %v1236_v29 = vld [vmem:[#allocation2 + $0x8] sm:$0xff]   ;;  %v1260_v30 = vld [vmem:[#allocation7 + $0x50] ss:$8 sps:$4 sm:$0xff]   ;;  %v1264_v33 = vld [vmem:[#allocation7 + $0x74] ss:$8 sps:$4 sm:$0xff]   ;;  %v119_v6 = vsub.s32 0, %v1568_v5 }
  0x55   :  { %261 = vmatprep.subr.bf16.mxu0 %v1220_v7  ;;  %623 = vmatpush1.bf16.msra.mxu1 %v1248_v17  ;;  %v1261_v31 = vld [vmem:[#allocation7 + $0x64] ss:$8 sps:$4 sm:$0xff]   ;;  %v1263_v32 = vld [vmem:[#allocation7 + $0x60] ss:$8 sps:$4 sm:$0xff]   ;;  %v1266_v35 = vld [vmem:[#allocation7 + $0x70] ss:$8 sps:$4 sm:$0xff]  }
  0x56   :  { %624 = vmatprep.subr.bf16.mxu1 %v1249_v19  ;;  %v1267_v36 = vld [vmem:[#allocation7 + $0x84] ss:$8 sps:$4 sm:$0xff]   ;;  %v1269_v37 = vld [vmem:[#allocation7 + $0x80] ss:$8 sps:$4 sm:$0xff]   ;;  %v1270_v38 = vld [vmem:[#allocation7 + $0x94] ss:$8 sps:$4 sm:$0xff]  }
  0x57   :  { %v1238_v39 = vld [vmem:[#allocation2 + $0x18] sm:$0xff]   ;;  %v1273_v41 = vld [vmem:[#allocation7 + $0xa4] ss:$8 sps:$4 sm:$0xff]   ;;  %v1275_v42 = vld [vmem:[#allocation7 + $0xa0] ss:$8 sps:$4 sm:$0xff]  }
  0x58   :  { %262 = vmatpush1.bf16.msra.mxu0 %v1222_v8  ;;  %v1272_v40 = vld [vmem:[#allocation7 + $0x90] ss:$8 sps:$4 sm:$0xff]   ;;  %v1276_v43 = vld [vmem:[#allocation7 + $0xb4] ss:$8 sps:$4 sm:$0xff]   ;;  %v1239_v44 = vld [vmem:[#allocation2 + $0x20] sm:$0xff]   ;;  %v123_v8 = vsub.s32 1, %v1568_v5 }
  0x59   :  { %263 = vmatprep.subr.bf16.mxu0 %v1223_v9  ;;  %625 = vmatpush1.bf16.msra.mxu1 %v1251_v21  ;;  %v1278_v45 = vld [vmem:[#allocation7 + $0xb0] ss:$8 sps:$4 sm:$0xff]   ;;  %v1279_v46 = vld [vmem:[#allocation7 + $0xc4] ss:$8 sps:$4 sm:$0xff]   ;;  %v1281_v47 = vld [vmem:[#allocation7 + $0xc0] ss:$8 sps:$4 sm:$0xff]  }
  0x5a   :  { %626 = vmatprep.subr.bf16.mxu1 %v1252_v23  ;;  %v1282_v48 = vld [vmem:[#allocation7 + $0xd4] ss:$8 sps:$4 sm:$0xff]   ;;  %v1240_v49 = vld [vmem:[#allocation2 + $0x28] sm:$0xff]   ;;  %v1284_v52 = vld [vmem:[#allocation7 + $0xd0] ss:$8 sps:$4 sm:$0xff]  }
  0x5b   :  { %v1241_v50 = vld [vmem:[#allocation2 + $0x30] sm:$0xff]   ;;  %v1242_v51 = vld [vmem:[#allocation2 + $0x38] sm:$0xff]   ;;  %v1285_v53 = vld [vmem:[#allocation7 + $0xe4] ss:$8 sps:$4 sm:$0xff]  }
  0x5c   :  { %264 = vmatpush1.bf16.msra.mxu0 %v1225_v10  ;;  %v1287_v54 = vld [vmem:[#allocation7 + $0xe0] ss:$8 sps:$4 sm:$0xff]   ;;  %v1288_v55 = vld [vmem:[#allocation7 + $0xf4] ss:$8 sps:$4 sm:$0xff]   ;;  %v1290_v56 = vld [vmem:[#allocation7 + $0xf0] ss:$8 sps:$4 sm:$0xff]  }
  0x5d   :  { %265 = vmatprep.subr.bf16.mxu0 %v1226_v11  ;;  %627 = vmatpush1.bf16.msra.mxu1 %v1254_v25  ;;  %v1291_v57 = vld [vmem:[#allocation8 + $0x40] sm:$0xff]   ;;  %v1293_v59 = vld [vmem:[#allocation8 + $0x48] sm:$0xff]   ;;  %v1295_v61 = vld [vmem:[#allocation8 + $0x50] sm:$0xff]  }
  0x5e   :  { %628 = vmatprep.subr.bf16.mxu1 %v1255_v26  ;;  %v1292_v58 = vld [vmem:[#allocation8] sm:$0xff]   ;;  %v1294_v60 = vld [vmem:[#allocation8 + $0x8] sm:$0xff]   ;;  %v1550_v62 = vld [vmem:[#allocation8 + $0x10] sm:$0xff]  }
  0x5f   :  { %v1552_v63 = vld [vmem:[#allocation8 + $0x58] sm:$0xff]   ;;  %v1558_v1 = vld [vmem:[#allocation8 + $0x60] sm:$0xff]   ;;  %v1564_v3 = vld [vmem:[#allocation8 + $0x68] sm:$0xff]  }
  0x60   :  { %266 = vmatpush1.bf16.msra.mxu0 %v1228_v12  ;;  %v1561_v2 = vld [vmem:[#allocation8 + $0x20] sm:$0xff]  }
  0x61   :  { %267 = vmatprep.subr.bf16.mxu0 %v1229_v13  ;;  %629 = vmatpush1.bf16.msra.mxu1 %v1257_v27  ;;  %v115_v7 = vld [vmem:[%s1702_s2] sm:$0x3] }
  0x62   :  { %630 = vmatprep.subr.bf16.mxu1 %v1258_v28  ;;  %v1577_v9 = vrot.slane %v115_v7, %v119_v6  ;;  %v1581_v10 = vrot.slane %v115_v7, %v123_v8 }
  0x64   :  { %268 = vmatpush1.bf16.msra.mxu0 %v1231_v18 }
  0x65   :  { %269 = vmatprep.subr.bf16.mxu0 %v1232_v20  ;;  %631 = vmatpush1.bf16.msra.mxu1 %v1260_v30 }
  0x66   :  { %632 = vmatprep.subr.bf16.mxu1 %v1261_v31 }
  0x68   :  { %270 = vmatpush1.bf16.msra.mxu0 %v1234_v22 }
  0x69   :  { %633 = vmatpush1.bf16.msra.mxu1 %v1263_v32  ;;  %1121 = vmatprep.subr.bf16.mxu0 %v1291_v57 }
  0x6a   :  { %634 = vmatprep.subr.bf16.mxu1 %v1264_v33 }
  0x6b   :  { %288 = vmatmul.mubr.bf16.vlgmr.msra.gmra.mrb[0].mxu0 %v1235_v24 }
  0x6c   :  { %297 = vmatprep.mubr.bf16.mxu0 %v1433_v0  ;;  %1122 = vmatpush3.bf16.msra.mxu0 %v1292_v58 }
  0x6d   :  { %635 = vmatpush1.bf16.msra.mxu1 %v1266_v35  ;;  %1123 = vmatprep.subr.bf16.mxu0 %v1293_v59 }
  0x6e   :  { %636 = vmatprep.subr.bf16.mxu1 %v1267_v36 }
  0x70   :  { %1124 = vmatpush3.bf16.msra.mxu0 %v1294_v60 }
  0x71   :  { %637 = vmatpush1.bf16.msra.mxu1 %v1269_v37  ;;  %1125 = vmatprep.subr.bf16.mxu0 %v1295_v61 }
  0x72   :  { %638 = vmatprep.subr.bf16.mxu1 %v1270_v38 }
  0x73   :  { %298 = vmatmul.mubr.bf16.gmra.mrb[4].mxu0 %v1236_v29 }
  0x74   :  { %307 = vmatprep.mubr.bf16.mxu0 %v1433_v0  ;;  %1126 = vmatpush3.bf16.msra.mxu0 %v1550_v62 }
  0x75   :  { %639 = vmatpush1.bf16.msra.mxu1 %v1272_v40  ;;  %1127 = vmatprep.subr.bf16.mxu0 %v1552_v63 }
  0x76   :  { %640 = vmatprep.subr.bf16.mxu1 %v1273_v41 }
  0x79   :  { %641 = vmatpush1.bf16.msra.mxu1 %v1275_v42 }
  0x7a   :  { %642 = vmatprep.subr.bf16.mxu1 %v1276_v43 }
  0x7b   :  { %308 = vmatmul.mubr.bf16.gmra.mrb[8].mxu0 %v1237_v34 }
  0x7c   :  { %317 = vmatprep.mubr.bf16.mxu0 %v1433_v0 }
  0x7d   :  { %643 = vmatpush1.bf16.msra.mxu1 %v1278_v45 }
  0x7e   :  { %644 = vmatprep.subr.bf16.mxu1 %v1279_v46 }
  0x81   :  { %645 = vmatpush1.bf16.msra.mxu1 %v1281_v47 }
  0x82   :  { %646 = vmatprep.subr.bf16.mxu1 %v1282_v48 }
  0x83   :  { %318 = vmatmul.mubr.bf16.gmra.mrb[12].mxu0 %v1238_v39 }
  0x84   :  { %327 = vmatprep.mubr.bf16.mxu0 %v1433_v0 }
  0x85   :  { %647 = vmatpush1.bf16.msra.mxu1 %v1284_v52 }
  0x86   :  { %648 = vmatprep.subr.bf16.mxu1 %v1285_v53 }
  0x89   :  { %649 = vmatpush1.bf16.msra.mxu1 %v1287_v54 }
  0x8a   :  { %650 = vmatprep.subr.bf16.mxu1 %v1288_v55 }
  0x8b   :  { %328 = vmatmul.mubr.bf16.gmra.mrb[16].mxu0 %v1239_v44 }
  0x8c   :  { %337 = vmatprep.mubr.bf16.mxu0 %v1433_v0 }
  0x8d   :  { %651 = vmatpush1.bf16.msra.mxu1 %v1290_v56 }
  0x8e   :  { %1185 = vmatprep.subr.bf16.mxu1 %v1291_v57 }
  0x93   :  { %338 = vmatmul.mubr.bf16.gmra.mrb[20].mxu0 %v1240_v49 }
  0x94   :  { %347 = vmatprep.mubr.bf16.mxu0 %v1433_v0 }
  0x9b   :  { %348 = vmatmul.mubr.bf16.gmra.mrb[24].mxu0 %v1241_v50 }
  0x9c   :  { %357 = vmatprep.mubr.bf16.mxu0 %v1433_v0  ;;  %v1555_v0 = vld [vmem:[#allocation8 + $0x18] sm:$0xff]  }
  0x9d   :  { %1128 = vmatpush3.bf16.msra.mxu0 %v1555_v0 }
  0x9e   :  { %1129 = vmatprep.subr.bf16.mxu0 %v1558_v1 }
  0xa1   :  { %1130 = vmatpush3.bf16.msra.mxu0 %v1561_v2 }
  0xa2   :  { %1131 = vmatprep.subr.bf16.mxu0 %v1564_v3 }
  0xa3   :  { %358 = vmatmul.mubr.bf16.gmra.mrb[28].mxu0 %v1242_v51 }
 0x13e   :  { %v289_v11 = vpop.f32.mrb[0].mxu0 }
 0x13f   :  { %v290_v12 = vadd.f32 %v289_v11, %v1577_v9  ;;  %v291_v13 = vpop.f32.mrb[1].mxu0 }
 0x140   :  { %v292_v14 = vadd.f32 %v291_v13, %v1581_v10  ;;  %v293_v15 = vpop.f32.mrb[2].mxu0 }
 0x141   :  { %v294_v16 = vadd.f32 %v293_v15, %v1577_v9  ;;  %v295_v17 = vpop.f32.mrb[3].mxu0  ;;  %v368_v19 = vmax.f32 %v290_v12, 0.0 }
 0x142   :  { %v296_v18 = vadd.f32 %v295_v17, %v1581_v10  ;;  %v369_v21 = vmax.f32 %v292_v14, 0.0 }
 0x143   :  { %v370_v20 = vmax.f32 %v294_v16, 0.0 }
 0x144   :  { %v371_v22 = vmax.f32 %v296_v18, 0.0 }
 0x145   :  { %v400_v23 = vpack.c.bf16 %v370_v20, %v368_v19 }
 0x146   :  { %v299_v24 = vpop.f32.mrb[4].mxu0  ;;  %v401_v25 = vpack.c.bf16 %v371_v22, %v369_v21 }
 0x147   :  { %v300_v26 = vadd.f32 %v299_v24, %v1577_v9  ;;  %v301_v27 = vpop.f32.mrb[5].mxu0 }
 0x148   :  { %v302_v28 = vadd.f32 %v301_v27, %v1581_v10  ;;  %v303_v29 = vpop.f32.mrb[6].mxu0  ;;  %652 = vmatprep.mubr.bf16.mxu1 %v401_v25 }
 0x149   :  { %v304_v30 = vadd.f32 %v303_v29, %v1577_v9  ;;  %v305_v31 = vpop.f32.mrb[7].mxu0  ;;  %653 = vmatmul.mubr.bf16.vlgmr.msra.gmra.mrb[0].mxu1 %v400_v23  ;;  %v372_v33 = vmax.f32 %v300_v26, 0.0 }
 0x14a   :  { %v306_v32 = vadd.f32 %v305_v31, %v1581_v10  ;;  %1193 = vmatpush3.bf16.msra.mxu1 %v1292_v58  ;;  %v373_v35 = vmax.f32 %v302_v28, 0.0 }
 0x14b   :  { %v374_v34 = vmax.f32 %v304_v30, 0.0  ;;  %1186 = vmatprep.subr.bf16.mxu1 %v1293_v59 }
 0x14c   :  { %v375_v36 = vmax.f32 %v306_v32, 0.0 }
 0x14d   :  { %v402_v37 = vpack.c.bf16 %v374_v34, %v372_v33 }
 0x14e   :  { %v403_v38 = vpack.c.bf16 %v375_v36, %v373_v35  ;;  %v309_v39 = vpop.f32.mrb[8].mxu0  ;;  %1194 = vmatpush3.bf16.msra.mxu1 %v1294_v60 }
 0x14f   :  { %v310_v40 = vadd.f32 %v309_v39, %v1577_v9  ;;  %v311_v41 = vpop.f32.mrb[9].mxu0  ;;  %1187 = vmatprep.subr.bf16.mxu1 %v1295_v61 }
 0x150   :  { %v312_v42 = vadd.f32 %v311_v41, %v1581_v10  ;;  %v313_v43 = vpop.f32.mrb[10].mxu0  ;;  %662 = vmatprep.mubr.bf16.mxu1 %v403_v38 }
 0x151   :  { %v314_v44 = vadd.f32 %v313_v43, %v1577_v9  ;;  %v315_v45 = vpop.f32.mrb[11].mxu0  ;;  %663 = vmatmul.mubr.bf16.gmra.mrb[4].mxu1 %v402_v37  ;;  %v376_v47 = vmax.f32 %v310_v40, 0.0 }
 0x152   :  { %v316_v46 = vadd.f32 %v315_v45, %v1581_v10  ;;  %1195 = vmatpush3.bf16.msra.mxu1 %v1550_v62  ;;  %v377_v49 = vmax.f32 %v312_v42, 0.0 }
 0x153   :  { %v378_v48 = vmax.f32 %v314_v44, 0.0  ;;  %1188 = vmatprep.subr.bf16.mxu1 %v1552_v63 }
 0x154   :  { %v379_v50 = vmax.f32 %v316_v46, 0.0 }
 0x155   :  { %v404_v51 = vpack.c.bf16 %v378_v48, %v376_v47 }
 0x156   :  { %v405_v52 = vpack.c.bf16 %v379_v50, %v377_v49  ;;  %v319_v53 = vpop.f32.mrb[12].mxu0  ;;  %1196 = vmatpush3.bf16.msra.mxu1 %v1555_v0 }
 0x157   :  { %v320_v54 = vadd.f32 %v319_v53, %v1577_v9  ;;  %v321_v55 = vpop.f32.mrb[13].mxu0  ;;  %1189 = vmatprep.subr.bf16.mxu1 %v1558_v1 }
 0x158   :  { %v322_v56 = vadd.f32 %v321_v55, %v1581_v10  ;;  %v323_v57 = vpop.f32.mrb[14].mxu0  ;;  %672 = vmatprep.mubr.bf16.mxu1 %v405_v52 }
 0x159   :  { %v324_v58 = vadd.f32 %v323_v57, %v1577_v9  ;;  %v325_v59 = vpop.f32.mrb[15].mxu0  ;;  %673 = vmatmul.mubr.bf16.gmra.mrb[8].mxu1 %v404_v51  ;;  %v380_v61 = vmax.f32 %v320_v54, 0.0 }
 0x15a   :  { %v326_v60 = vadd.f32 %v325_v59, %v1581_v10  ;;  %1197 = vmatpush3.bf16.msra.mxu1 %v1561_v2  ;;  %v381_v63 = vmax.f32 %v322_v56, 0.0 }
 0x15b   :  { %v382_v62 = vmax.f32 %v324_v58, 0.0  ;;  %1190 = vmatprep.subr.bf16.mxu1 %v1564_v3 }
 0x15c   :  { %v383_v0 = vmax.f32 %v326_v60, 0.0 }
 0x15d   :  { %v406_v4 = vpack.c.bf16 %v382_v62, %v380_v61 }
 0x15e   :  { %v407_v1 = vpack.c.bf16 %v383_v0, %v381_v63  ;;  %v329_v7 = vpop.f32.mrb[16].mxu0  ;;  %v1302_v0 = vld [vmem:[#allocation8 + $0x28] sm:$0xff]  }
 0x15f   :  { %v330_v11 = vadd.f32 %v329_v7, %v1577_v9  ;;  %v331_v12 = vpop.f32.mrb[17].mxu0  ;;  %1132 = vmatpush3.bf16.msra.mxu0 %v1302_v0  ;;  %1198 = vmatpush3.bf16.msra.mxu1 %v1302_v0  ;;  %v1306_v7 = vld [vmem:[#allocation8 + $0x38] sm:$0xff]  }
 0x160   :  { %v332_v13 = vadd.f32 %v331_v12, %v1581_v10  ;;  %v333_v14 = vpop.f32.mrb[18].mxu0  ;;  %682 = vmatprep.mubr.bf16.mxu1 %v407_v1  ;;  %v1304_v1 = vld [vmem:[#allocation8 + $0x30] sm:$0xff]  }
 0x161   :  { %v334_v15 = vadd.f32 %v333_v14, %v1577_v9  ;;  %v335_v16 = vpop.f32.mrb[19].mxu0  ;;  %683 = vmatmul.mubr.bf16.gmra.mrb[12].mxu1 %v406_v4  ;;  %v384_v17 = vmax.f32 %v330_v11, 0.0  ;;  %v1303_v4 = vld [vmem:[#allocation8 + $0x70] sm:$0xff]  }
 0x162   :  { %v336_v2 = vadd.f32 %v335_v16, %v1581_v10  ;;  %v385_v18 = vmax.f32 %v332_v13, 0.0  ;;  %1133 = vmatprep.subr.bf16.mxu0 %v1303_v4  ;;  %1191 = vmatprep.subr.bf16.mxu1 %v1303_v4 }
 0x163   :  { %v386_v3 = vmax.f32 %v334_v15, 0.0  ;;  %1134 = vmatpush3.bf16.msra.mxu0 %v1304_v1  ;;  %1199 = vmatpush3.bf16.msra.mxu1 %v1304_v1 }
 0x164   :  { %v387_v19 = vmax.f32 %v336_v2, 0.0 }
 0x165   :  { %v408_v20 = vpack.c.bf16 %v386_v3, %v384_v17 }
 0x166   :  { %v409_v21 = vpack.c.bf16 %v387_v19, %v385_v18  ;;  %v339_v22 = vpop.f32.mrb[20].mxu0 }
 0x167   :  { %v340_v23 = vadd.f32 %v339_v22, %v1577_v9  ;;  %v341_v24 = vpop.f32.mrb[21].mxu0 }
 0x168   :  { %v342_v25 = vadd.f32 %v341_v24, %v1581_v10  ;;  %v343_v26 = vpop.f32.mrb[22].mxu0  ;;  %692 = vmatprep.mubr.bf16.mxu1 %v409_v21 }
 0x169   :  { %v344_v27 = vadd.f32 %v343_v26, %v1577_v9  ;;  %v345_v28 = vpop.f32.mrb[23].mxu0  ;;  %693 = vmatmul.mubr.bf16.gmra.mrb[16].mxu1 %v408_v20  ;;  %v388_v30 = vmax.f32 %v340_v23, 0.0 }
 0x16a   :  { %v346_v29 = vadd.f32 %v345_v28, %v1581_v10  ;;  %v389_v32 = vmax.f32 %v342_v25, 0.0 }
 0x16b   :  { %v390_v31 = vmax.f32 %v344_v27, 0.0 }
 0x16c   :  { %v391_v33 = vmax.f32 %v346_v29, 0.0 }
 0x16d   :  { %v410_v34 = vpack.c.bf16 %v390_v31, %v388_v30 }
 0x16e   :  { %v411_v35 = vpack.c.bf16 %v391_v33, %v389_v32  ;;  %v349_v36 = vpop.f32.mrb[24].mxu0 }
 0x16f   :  { %v350_v37 = vadd.f32 %v349_v36, %v1577_v9  ;;  %v351_v38 = vpop.f32.mrb[25].mxu0 }
 0x170   :  { %v352_v39 = vadd.f32 %v351_v38, %v1581_v10  ;;  %v353_v40 = vpop.f32.mrb[26].mxu0  ;;  %702 = vmatprep.mubr.bf16.mxu1 %v411_v35 }
 0x171   :  { %v354_v41 = vadd.f32 %v353_v40, %v1577_v9  ;;  %v355_v42 = vpop.f32.mrb[27].mxu0  ;;  %703 = vmatmul.mubr.bf16.gmra.mrb[20].mxu1 %v410_v34  ;;  %v392_v44 = vmax.f32 %v350_v37, 0.0 }
 0x172   :  { %v356_v43 = vadd.f32 %v355_v42, %v1581_v10  ;;  %v393_v46 = vmax.f32 %v352_v39, 0.0 }
 0x173   :  { %v394_v45 = vmax.f32 %v354_v41, 0.0 }
 0x174   :  { %v395_v47 = vmax.f32 %v356_v43, 0.0 }
 0x175   :  { %v412_v48 = vpack.c.bf16 %v394_v45, %v392_v44 }
 0x176   :  { %v413_v49 = vpack.c.bf16 %v395_v47, %v393_v46  ;;  %v359_v50 = vpop.f32.mrb[28].mxu0 }
 0x177   :  { %v360_v51 = vadd.f32 %v359_v50, %v1577_v9  ;;  %v361_v52 = vpop.f32.mrb[29].mxu0 }
 0x178   :  { %v362_v53 = vadd.f32 %v361_v52, %v1581_v10  ;;  %v363_v54 = vpop.f32.mrb[30].mxu0  ;;  %712 = vmatprep.mubr.bf16.mxu1 %v413_v49 }
 0x179   :  { %v364_v55 = vadd.f32 %v363_v54, %v1577_v9  ;;  %v365_v56 = vpop.f32.mrb[31].mxu0  ;;  %713 = vmatmul.mubr.bf16.gmra.mrb[24].mxu1 %v412_v48  ;;  %v396_v58 = vmax.f32 %v360_v51, 0.0  ;;  %v1305_v9 = vld [vmem:[#allocation8 + $0x78] sm:$0xff]  }
 0x17a   :  { %v366_v57 = vadd.f32 %v365_v56, %v1581_v10  ;;  %v397_v60 = vmax.f32 %v362_v53, 0.0  ;;  %1135 = vmatprep.subr.bf16.mxu0 %v1305_v9  ;;  %1192 = vmatprep.subr.bf16.mxu1 %v1305_v9  ;;  %v448_v10 = vld [vmem:[%s1704_s4] sm:$0x3] }
 0x17b   :  { %v398_v59 = vmax.f32 %v364_v55, 0.0  ;;  %1136 = vmatpush3.bf16.msra.mxu0 %v1306_v7  ;;  %1200 = vmatpush3.bf16.msra.mxu1 %v1306_v7  ;;  %v1626_v11 = vrot.slane %v448_v10, %v119_v6  ;;  %v1630_v12 = vrot.slane %v448_v10, %v123_v8 }
 0x17c   :  { %v399_v61 = vmax.f32 %v366_v57, 0.0 }
 0x17d   :  { %v414_v62 = vpack.c.bf16 %v398_v59, %v396_v58 }
 0x17e   :  { %v415_v63 = vpack.c.bf16 %v399_v61, %v397_v60 }
 0x180   :  { %722 = vmatprep.mubr.bf16.mxu1 %v415_v63 }
 0x181   :  { %723 = vmatmul.mubr.bf16.gmra.mrb[28].mxu1 %v414_v62 }
 0x21c   :  { %v654_v13 = vpop.f32.mrb[0].mxu1 }
 0x21d   :  { %v655_v14 = vadd.f32 %v654_v13, %v1626_v11  ;;  %v656_v15 = vpop.f32.mrb[1].mxu1 }
 0x21e   :  { %v657_v16 = vadd.f32 %v656_v15, %v1630_v12  ;;  %v658_v2 = vpop.f32.mrb[2].mxu1 }
 0x21f   :  { %v659_v17 = vadd.f32 %v658_v2, %v1626_v11  ;;  %v660_v3 = vpop.f32.mrb[3].mxu1  ;;  %v733_v19 = vmax.f32 %v655_v14, 0.0 }
 0x220   :  { %v661_v18 = vadd.f32 %v660_v3, %v1630_v12  ;;  %v734_v6 = vmax.f32 %v657_v16, 0.0 }
 0x221   :  { %v735_v20 = vmax.f32 %v659_v17, 0.0 }
 0x222   :  { %v736_v21 = vmax.f32 %v661_v18, 0.0 }
 0x223   :  { %v765_v22 = vpack.c.bf16 %v735_v20, %v733_v19 }
 0x224   :  { %v766_v5 = vpack.c.bf16 %v736_v21, %v734_v6  ;;  %v664_v8 = vpop.f32.mrb[4].mxu1 }
 0x225   :  { %v665_v23 = vadd.f32 %v664_v8, %v1626_v11  ;;  %v666_v24 = vpop.f32.mrb[5].mxu1 }
 0x226   :  { %v667_v25 = vadd.f32 %v666_v24, %v1630_v12  ;;  %v668_v26 = vpop.f32.mrb[6].mxu1  ;;  %948 = vmatprep.mubr.bf16.mxu0 %v766_v5 }
 0x227   :  { %v669_v27 = vadd.f32 %v668_v26, %v1626_v11  ;;  %v670_v28 = vpop.f32.mrb[7].mxu1  ;;  %949 = vmatmul.mubr.bf16.vlgmr.msra.gmra.mrb[32].mxu0 %v765_v22  ;;  %v737_v30 = vmax.f32 %v665_v23, 0.0 }
 0x228   :  { %v671_v29 = vadd.f32 %v670_v28, %v1630_v12  ;;  %v738_v32 = vmax.f32 %v667_v25, 0.0 }
 0x229   :  { %v739_v31 = vmax.f32 %v669_v27, 0.0 }
 0x22a   :  { %v740_v33 = vmax.f32 %v671_v29, 0.0 }
 0x22b   :  { %v767_v34 = vpack.c.bf16 %v739_v31, %v737_v30 }
 0x22c   :  { %v768_v35 = vpack.c.bf16 %v740_v33, %v738_v32  ;;  %v674_v36 = vpop.f32.mrb[8].mxu1 }
 0x22d   :  { %v675_v37 = vadd.f32 %v674_v36, %v1626_v11  ;;  %v676_v38 = vpop.f32.mrb[9].mxu1 }
 0x22e   :  { %v677_v39 = vadd.f32 %v676_v38, %v1630_v12  ;;  %v678_v40 = vpop.f32.mrb[10].mxu1  ;;  %956 = vmatprep.mubr.bf16.mxu0 %v768_v35 }
 0x22f   :  { %v679_v41 = vadd.f32 %v678_v40, %v1626_v11  ;;  %v680_v42 = vpop.f32.mrb[11].mxu1  ;;  %957 = vmatmul.mubr.bf16.gmra.mrb[36].mxu0 %v767_v34  ;;  %v741_v44 = vmax.f32 %v675_v37, 0.0 }
 0x230   :  { %v681_v43 = vadd.f32 %v680_v42, %v1630_v12  ;;  %v742_v46 = vmax.f32 %v677_v39, 0.0 }
 0x231   :  { %v743_v45 = vmax.f32 %v679_v41, 0.0 }
 0x232   :  { %v744_v47 = vmax.f32 %v681_v43, 0.0 }
 0x233   :  { %v769_v48 = vpack.c.bf16 %v743_v45, %v741_v44 }
 0x234   :  { %v770_v49 = vpack.c.bf16 %v744_v47, %v742_v46  ;;  %v684_v50 = vpop.f32.mrb[12].mxu1 }
 0x235   :  { %v685_v51 = vadd.f32 %v684_v50, %v1626_v11  ;;  %v686_v52 = vpop.f32.mrb[13].mxu1 }
 0x236   :  { %v687_v53 = vadd.f32 %v686_v52, %v1630_v12  ;;  %v688_v54 = vpop.f32.mrb[14].mxu1  ;;  %964 = vmatprep.mubr.bf16.mxu0 %v770_v49 }
 0x237   :  { %v689_v55 = vadd.f32 %v688_v54, %v1626_v11  ;;  %v690_v56 = vpop.f32.mrb[15].mxu1  ;;  %965 = vmatmul.mubr.bf16.gmra.mrb[40].mxu0 %v769_v48  ;;  %v745_v58 = vmax.f32 %v685_v51, 0.0 }
 0x238   :  { %v691_v57 = vadd.f32 %v690_v56, %v1630_v12  ;;  %v746_v60 = vmax.f32 %v687_v53, 0.0 }
 0x239   :  { %v747_v59 = vmax.f32 %v689_v55, 0.0 }
 0x23a   :  { %v748_v61 = vmax.f32 %v691_v57, 0.0 }
 0x23b   :  { %v771_v62 = vpack.c.bf16 %v747_v59, %v745_v58  ;;  %v1667_v59 = vld [vmem:[%s1706_s6] ss:$0 sm:$0xff]  ;;  %s1434_s6 = smov [#allocation10]  }
 0x23c   :  { %v772_v63 = vpack.c.bf16 %v748_v61, %v746_v60  ;;  %v694_v0 = vpop.f32.mrb[16].mxu1  ;;  %s1034_s8 = sshll.u32 %s1434_s6, 4  ;;  %s1035_s8 = int_to_ptr.vmem [resolvable:$true] %s1034_s8 }
 0x23d   :  { %v695_v4 = vadd.f32 %v694_v0, %v1626_v11  ;;  %v696_v1 = vpop.f32.mrb[17].mxu1  ;;  %s1395_s9 = scalar_lea.vmem %s1035_s8, 2048  ;;  %p1400_p5 = scmp.lt.s32.totalorder %s1035_s8, %s1035_s8 }
 0x23e   :  { %v697_v9 = vadd.f32 %v696_v1, %v1630_v12  ;;  %v698_v7 = vpop.f32.mrb[18].mxu1  ;;  %972 = vmatprep.mubr.bf16.mxu0 %v772_v63  ;;  %p1396_p4 = scmp.ne.s32.totalorder %s1035_s8, %s1395_s9  ;;  %p1401_p6 = scmp.lt.s32.totalorder %s1395_s9, %s1395_s9 }
 0x23f   :  { %v699_v10 = vadd.f32 %v698_v7, %v1626_v11  ;;  %v700_v13 = vpop.f32.mrb[19].mxu1  ;;  %973 = vmatmul.mubr.bf16.gmra.mrb[44].mxu0 %v771_v62  ;;  %v749_v15 = vmax.f32 %v695_v4, 0.0 }
 0x240   :  { %v701_v14 = vadd.f32 %v700_v13, %v1630_v12  ;;  %v750_v2 = vmax.f32 %v697_v9, 0.0  ;;  %p1402_p7 = por %p1401_p6, %p1400_p5 }
 0x241   :  { %v751_v16 = vmax.f32 %v699_v10, 0.0 }
 0x242   :  { %v752_v17 = vmax.f32 %v701_v14, 0.0  ;;  %p1403_p8 = pnand %p1402_p7, %p1396_p4 }
 0x243   :  { %v773_v3 = vpack.c.bf16 %v751_v16, %v749_v15 }
 0x244   :  { %v774_v18 = vpack.c.bf16 %v752_v17, %v750_v2  ;;  %v704_v19 = vpop.f32.mrb[20].mxu1 }
 0x245   :  { %v705_v20 = vadd.f32 %v704_v19, %v1626_v11  ;;  %v706_v6 = vpop.f32.mrb[21].mxu1 }
 0x246   :  { %v707_v21 = vadd.f32 %v706_v6, %v1630_v12  ;;  %v708_v22 = vpop.f32.mrb[22].mxu1  ;;  %980 = vmatprep.mubr.bf16.mxu0 %v774_v18 }
 0x247   :  { %v709_v5 = vadd.f32 %v708_v22, %v1626_v11  ;;  %v710_v8 = vpop.f32.mrb[23].mxu1  ;;  %981 = vmatmul.mubr.bf16.gmra.mrb[48].mxu0 %v773_v3  ;;  %v753_v24 = vmax.f32 %v705_v20, 0.0 }
 0x248   :  { %v711_v23 = vadd.f32 %v710_v8, %v1630_v12  ;;  %v754_v26 = vmax.f32 %v707_v21, 0.0 }
 0x249   :  { %v755_v25 = vmax.f32 %v709_v5, 0.0 }
 0x24a   :  { %v756_v27 = vmax.f32 %v711_v23, 0.0 }
 0x24b   :  { %v775_v28 = vpack.c.bf16 %v755_v25, %v753_v24 }
 0x24c   :  { %v776_v29 = vpack.c.bf16 %v756_v27, %v754_v26  ;;  %v714_v30 = vpop.f32.mrb[24].mxu1 }
 0x24d   :  { %v715_v31 = vadd.f32 %v714_v30, %v1626_v11  ;;  %v716_v32 = vpop.f32.mrb[25].mxu1 }
 0x24e   :  { %v717_v33 = vadd.f32 %v716_v32, %v1630_v12  ;;  %v718_v34 = vpop.f32.mrb[26].mxu1  ;;  %988 = vmatprep.mubr.bf16.mxu0 %v776_v29 }
 0x24f   :  { %v719_v35 = vadd.f32 %v718_v34, %v1626_v11  ;;  %v720_v36 = vpop.f32.mrb[27].mxu1  ;;  %989 = vmatmul.mubr.bf16.gmra.mrb[52].mxu0 %v775_v28  ;;  %v757_v38 = vmax.f32 %v715_v31, 0.0 }
 0x250   :  { %v721_v37 = vadd.f32 %v720_v36, %v1630_v12  ;;  %v758_v40 = vmax.f32 %v717_v33, 0.0 }
 0x251   :  { %v759_v39 = vmax.f32 %v719_v35, 0.0 }
 0x252   :  { %v760_v41 = vmax.f32 %v721_v37, 0.0 }
 0x253   :  { %v777_v42 = vpack.c.bf16 %v759_v39, %v757_v38 }
 0x254   :  { %v778_v43 = vpack.c.bf16 %v760_v41, %v758_v40  ;;  %v724_v44 = vpop.f32.mrb[28].mxu1 }
 0x255   :  { %v725_v45 = vadd.f32 %v724_v44, %v1626_v11  ;;  %v726_v46 = vpop.f32.mrb[29].mxu1 }
 0x256   :  { %v727_v47 = vadd.f32 %v726_v46, %v1630_v12  ;;  %v728_v48 = vpop.f32.mrb[30].mxu1  ;;  %996 = vmatprep.mubr.bf16.mxu1 %v778_v43 }
 0x257   :  { %v729_v49 = vadd.f32 %v728_v48, %v1626_v11  ;;  %v730_v50 = vpop.f32.mrb[31].mxu1  ;;  %997 = vmatmul.mubr.bf16.vlgmr.msra.gmra.mrb[32].mxu1 %v777_v42  ;;  %v761_v52 = vmax.f32 %v725_v45, 0.0 }
 0x258   :  { %v731_v51 = vadd.f32 %v730_v50, %v1630_v12  ;;  %v762_v54 = vmax.f32 %v727_v47, 0.0 }
 0x259   :  { %v763_v53 = vmax.f32 %v729_v49, 0.0 }
 0x25a   :  { %v764_v55 = vmax.f32 %v731_v51, 0.0 }
 0x25b   :  { %v779_v56 = vpack.c.bf16 %v763_v53, %v761_v52 }
 0x25c   :  { %v780_v57 = vpack.c.bf16 %v764_v55, %v762_v54 }
 0x25e   :  { %1004 = vmatprep.mubr.bf16.mxu1 %v780_v57 }
 0x25f   :  { %1005 = vmatmul.mubr.bf16.gmra.mrb[36].mxu1 %v779_v56 }
 0x2fa   :  { %v1137_v58 = vpop.f32.mrb[32].mxu0 }
 0x2fb   :  { %v1138_v60 = vpop.f32.mrb[33].mxu0 }
 0x2fc   :  { %v1139_v11 = vadd.f32 %v1138_v60, %v1137_v58  ;;  %v1140_v61 = vpop.f32.mrb[34].mxu0 }
 0x2fd   :  { %v1141_v62 = vpop.f32.mrb[35].mxu0 }
 0x2fe   :  { %v951_v12 = vadd.f32 %v1139_v11, %v1667_v59  ;;  %v1142_v63 = vadd.f32 %v1141_v62, %v1140_v61 }
 0x300   :  { %1013 = vst [vmem:[#allocation10] sm:$0xff] %v951_v12  ;;  %v954_v0 = vadd.f32 %v1142_v63, %v1667_v59 }
 0x302   :  { %1014 = vst [vmem:[#allocation10 + $0x8] sm:$0xff] %v954_v0  ;;  %v1143_v4 = vpop.f32.mrb[36].mxu0 }
 0x303   :  { %v1144_v1 = vpop.f32.mrb[37].mxu0 }
 0x304   :  { %v1145_v9 = vadd.f32 %v1144_v1, %v1143_v4  ;;  %v1146_v7 = vpop.f32.mrb[38].mxu0 }
 0x305   :  { %v1147_v10 = vpop.f32.mrb[39].mxu0 }
 0x306   :  { %v959_v13 = vadd.f32 %v1145_v9, %v1667_v59  ;;  %v1148_v14 = vadd.f32 %v1147_v10, %v1146_v7 }
 0x308   :  { %1015 = vst [vmem:[#allocation10 + $0x10] sm:$0xff] %v959_v13  ;;  %v962_v15 = vadd.f32 %v1148_v14, %v1667_v59 }
 0x30a   :  { %1016 = vst [vmem:[#allocation10 + $0x18] sm:$0xff] %v962_v15  ;;  %v1149_v16 = vpop.f32.mrb[40].mxu0 }
 0x30b   :  { %v1150_v2 = vpop.f32.mrb[41].mxu0 }
 0x30c   :  { %v1151_v17 = vadd.f32 %v1150_v2, %v1149_v16  ;;  %v1152_v3 = vpop.f32.mrb[42].mxu0 }
 0x30d   :  { %v1153_v18 = vpop.f32.mrb[43].mxu0 }
 0x30e   :  { %v967_v19 = vadd.f32 %v1151_v17, %v1667_v59  ;;  %v1154_v20 = vadd.f32 %v1153_v18, %v1152_v3 }
 0x310   :  { %1017 = vst [vmem:[#allocation10 + $0x20] sm:$0xff] %v967_v19  ;;  %v970_v6 = vadd.f32 %v1154_v20, %v1667_v59 }
 0x312   :  { %1018 = vst [vmem:[#allocation10 + $0x28] sm:$0xff] %v970_v6  ;;  %v1155_v21 = vpop.f32.mrb[44].mxu0 }
 0x313   :  { %v1156_v22 = vpop.f32.mrb[45].mxu0 }
 0x314   :  { %v1157_v5 = vadd.f32 %v1156_v22, %v1155_v21  ;;  %v1158_v8 = vpop.f32.mrb[46].mxu0 }
 0x315   :  { %v1159_v23 = vpop.f32.mrb[47].mxu0 }
 0x316   :  { %v975_v24 = vadd.f32 %v1157_v5, %v1667_v59  ;;  %v1160_v25 = vadd.f32 %v1159_v23, %v1158_v8 }
 0x318   :  { %1019 = vst [vmem:[#allocation10 + $0x30] sm:$0xff] %v975_v24  ;;  %v978_v26 = vadd.f32 %v1160_v25, %v1667_v59 }
 0x31a   :  { %1020 = vst [vmem:[#allocation10 + $0x38] sm:$0xff] %v978_v26  ;;  %v1161_v27 = vpop.f32.mrb[48].mxu0 }
 0x31b   :  { %v1162_v28 = vpop.f32.mrb[49].mxu0 }
 0x31c   :  { %v1163_v29 = vadd.f32 %v1162_v28, %v1161_v27  ;;  %v1164_v30 = vpop.f32.mrb[50].mxu0 }
 0x31d   :  { %v1165_v31 = vpop.f32.mrb[51].mxu0 }
 0x31e   :  { %v983_v32 = vadd.f32 %v1163_v29, %v1667_v59  ;;  %v1166_v33 = vadd.f32 %v1165_v31, %v1164_v30 }
 0x320   :  { %1021 = vst [vmem:[#allocation10 + $0x40] sm:$0xff] %v983_v32  ;;  %v986_v34 = vadd.f32 %v1166_v33, %v1667_v59 }
 0x322   :  { %1022 = vst [vmem:[#allocation10 + $0x48] sm:$0xff] %v986_v34  ;;  %v1167_v35 = vpop.f32.mrb[52].mxu0 }
 0x323   :  { %v1168_v36 = vpop.f32.mrb[53].mxu0 }
 0x324   :  { %v1169_v37 = vadd.f32 %v1168_v36, %v1167_v35  ;;  %v1170_v38 = vpop.f32.mrb[54].mxu0 }
 0x325   :  { %v1171_v39 = vpop.f32.mrb[55].mxu0 }
 0x326   :  { %v991_v40 = vadd.f32 %v1169_v37, %v1667_v59  ;;  %v1172_v41 = vadd.f32 %v1171_v39, %v1170_v38 }
 0x328   :  { %1023 = vst [vmem:[#allocation10 + $0x50] sm:$0xff] %v991_v40  ;;  %v994_v42 = vadd.f32 %v1172_v41, %v1667_v59 }
 0x32a   :  { %1024 = vst [vmem:[#allocation10 + $0x58] sm:$0xff] %v994_v42  ;;  %v1173_v43 = vpop.f32.mrb[32].mxu1 }
 0x32b   :  { %v1174_v44 = vpop.f32.mrb[33].mxu1 }
 0x32c   :  { %v1175_v45 = vadd.f32 %v1174_v44, %v1173_v43  ;;  %v1176_v46 = vpop.f32.mrb[34].mxu1 }
 0x32d   :  { %v1177_v47 = vpop.f32.mrb[35].mxu1 }
 0x32e   :  { %v999_v48 = vadd.f32 %v1175_v45, %v1667_v59  ;;  %v1178_v49 = vadd.f32 %v1177_v47, %v1176_v46 }
 0x330   :  { %1025 = vst [vmem:[#allocation10 + $0x60] sm:$0xff] %v999_v48  ;;  %v1002_v50 = vadd.f32 %v1178_v49, %v1667_v59 }
 0x332   :  { %1026 = vst [vmem:[#allocation10 + $0x68] sm:$0xff] %v1002_v50  ;;  %v1179_v51 = vpop.f32.mrb[36].mxu1 }
 0x333   :  { %v1180_v52 = vpop.f32.mrb[37].mxu1 }
 0x334   :  { %v1181_v53 = vadd.f32 %v1180_v52, %v1179_v51  ;;  %v1182_v54 = vpop.f32.mrb[38].mxu1 }
 0x335   :  { %v1183_v55 = vpop.f32.mrb[39].mxu1 }
 0x336   :  { %v1007_v56 = vadd.f32 %v1181_v53, %v1667_v59  ;;  %v1184_v57 = vadd.f32 %v1183_v55, %v1182_v54 }
 0x338   :  { %1027 = vst [vmem:[#allocation10 + $0x70] sm:$0xff] %v1007_v56  ;;  %v1010_v58 = vadd.f32 %v1184_v57, %v1667_v59 }
 0x33a   :  { %1028 = vst [vmem:[#allocation10 + $0x78] sm:$0xff] %v1010_v58 }
 0x33b   :  { %1406 = shalt.err (!%p1403_p8)
}
 0x33c   :  { %s1407_s14 = scalar_lea.hbm %s1707_s7, 2048 }
 0x33d   :  { %p1408_p9 = scmp.ne.s32.totalorder %s1707_s7, %s1407_s14  ;;  %p1411_p10 = scmp.lt.u32.totalorder %s1407_s14, %s1707_s7 }
 0x33f   :  { %p1413_p11 = pnand %p1411_p10, %p1408_p9 }
 0x341   :  { %1416 = shalt.err (!%p1413_p11)
}
 0x342   :  { %1040 = dma.vmem_to_hbm [thread:$0]  %s1035_s8, 2048, %s1707_s7, [#allocation4], %s1426_s11, %s1426_s11, %s1427_s12  }
 0x343   :  { %1423 = dma.done.wait [#allocation4], 2048  }
 0x344   :  { %1424 = vsyncadd [#allocation4], 4294965248 }
 0x345   :  { %1044 = vsyncpa [#allocation3], 1 }
 0x346   :  { %1045 = vsyncpa [#allocation6], 1 }
 0x347   :  { %1046 = vsyncpa [#allocation9], 1 }
 0x348   :  { %1047 = vsyncpa [#allocation4], 1 }

</bundles_post_ra>
